<compile_context>
chip_gen: v5e
topology: v5e:2x2
jax: 0.10.0
libtpu: 0.0.40
codegen_flags: <defaults>
</compile_context>

<pallas_src>
import functools

import jax
import jax.numpy as jnp
from jax import lax
from jax.experimental import pallas as pl
from jax.experimental.pallas import tpu as pltpu


def _moe_combine_kernel(row_ref, seq_ref, nact_ref, scale_ref, eo_hbm,
                        out_ref, buf_ref, sem_ref):
    """One grid step = one batch tile; in-kernel loop over the active routes.

    row_ref:   (n_routes,) i32  SMEM  element row in the merged (E*S) axis, active first
    seq_ref:   (n_routes,) i32  SMEM  target seq position of each route
    nact_ref:  (1,)        i32  SMEM  number of active (nonzero-scale) routes
    scale_ref: (n_routes,) f32  SMEM  mask value of each route (1.0 for active ones)
    eo_hbm:    (B, E*S, D) f32  HBM   expert_outputs with merged (expert, seq) axis
    out_ref:   (Bt, S, D)  f32  VMEM  output block for this batch tile
    buf_ref:   (2, Bt, 1, D) f32 VMEM double-buffered gather landing pad
    sem_ref:   (2,) DMA semaphores
    """
    b = pl.program_id(0)
    Bt, S, D = out_ref.shape
    b0 = b * Bt                      # first batch row of this tile
    n_act = nact_ref[0]

    def start_fetch(j, slot):
        # Gather the (Bt, 1, D) routed rows expert_outputs[b0:b0+Bt, row[j], :].
        pltpu.make_async_copy(
            eo_hbm.at[pl.ds(b0, Bt), pl.ds(row_ref[j], 1), :],
            buf_ref.at[slot],
            sem_ref.at[slot],
        ).start()

    def wait_fetch(slot):
        pltpu.make_async_copy(
            eo_hbm.at[pl.ds(b0, Bt), pl.ds(0, 1), :],
            buf_ref.at[slot],
            sem_ref.at[slot],
        ).wait()

    # Prime the pipeline before zero-filling the accumulator so the first gather
    # DMA overlaps the zero-init stores.
    @pl.when(n_act > 0)
    def _():
        start_fetch(0, 0)

    out_ref[...] = jnp.zeros_like(out_ref)

    @pl.loop(0, n_act)
    def _(j):
        slot = j % 2
        wait_fetch(slot)

        # Prefetch the next route while we accumulate this one.
        @pl.when(j + 1 < n_act)
        def _():
            start_fetch(j + 1, 1 - slot)

        s = seq_ref[j]               # scalar i32: output seq row this route lands on
        g = scale_ref[j]             # scalar f32: mask value (1.0 after compaction)
        # Row-targeted accumulate: touch only the (Bt, 1, D) row this route hits
        # instead of a full (Bt, S, D) one-hot FMA.
        out_ref[:, pl.ds(s, 1), :] = out_ref[:, pl.ds(s, 1), :] + buf_ref[slot] * g


def _pick_batch_tile(B, S, D, itemsize):
    """Largest divisor of B that (a) keeps >= 2 batch tiles (v7x megacore) and
    (b) keeps the double-buffered output block inside the hardware VMEM budget."""
    try:
        vmem_cap = int(pltpu.get_tpu_info().vmem_capacity_bytes)
    except Exception:  # pragma: no cover - conservative (v7x-sized) fallback
        vmem_cap = 64 * 1024 * 1024
    out_block_budget = int(vmem_cap * 0.35)   # output block is double-buffered
    bt_cap = max(1, B // 2)
    Bt = 1
    for cand in range(bt_cap, 0, -1):
        if B % cand == 0 and cand * S * D * itemsize <= out_block_budget:
            Bt = cand
            break
    return Bt, vmem_cap


def moe_combine(expert_outputs, top_k_indices, route_scale):
    """out[b, s, d] = sum_e expert_outputs[b, e, s, d] * mask[e, s], where mask's
    nonzero structure is described sparsely: row e -> column top_k_indices[e, k]
    with value route_scale[e, k] (0 or 1 after capacity masking)."""
    B, E, S, D = expert_outputs.shape
    # Reference broadcast requires these equalities (see header comment).
    assert B == E and E == S, "reference broadcast needs batch == experts == seq"
    K = top_k_indices.shape[-1]
    n_routes = B * K

    idx = top_k_indices.reshape(B, K).astype(jnp.int32)
    scl = route_scale.reshape(B, K).astype(jnp.float32)

    # Sparse routing description: route r = (mask-row e, choice k) adds
    # expert_outputs[:, e, idx[e,k], :] * scl[e,k] into out[:, idx[e,k], :].
    row_flat = (jnp.arange(B, dtype=jnp.int32)[:, None] * S + idx).reshape(n_routes)
    seq_flat = idx.reshape(n_routes)
    scl_flat = scl.reshape(n_routes)

    # Compact: active routes first; dead (capacity-masked) routes never reach the
    # kernel, so they cost no DMA / compute / loop iteration.
    inactive = (scl_flat == 0.0).astype(jnp.int32)
    order = jnp.argsort(inactive)
    row_sorted = row_flat[order]
    seq_sorted = seq_flat[order]
    scl_sorted = scl_flat[order]
    n_act = jnp.sum(1 - inactive).astype(jnp.int32).reshape(1)

    # Merge (E, S) so each routed row is one element along the second-minor axis
    # (free, contiguous row-major reshape).
    eo2 = expert_outputs.reshape(B, E * S, D)

    itemsize = 4  # float32
    Bt, vmem_cap = _pick_batch_tile(B, S, D, itemsize)

    out_block_bytes = Bt * S * D * itemsize
    gather_bytes = 2 * Bt * D * itemsize
    need = 2 * out_block_bytes + gather_bytes + (1 << 20)
    vmem_limit = int(min(0.9 * vmem_cap, max(2 * need, 16 << 20)))

    grid_spec = pltpu.PrefetchScalarGridSpec(
        num_scalar_prefetch=3,              # row_sorted, seq_sorted, n_act -> SMEM
        grid=(B // Bt,),
        in_specs=[
            # Route scales live in SMEM; read as scalars inside the kernel.
            pl.BlockSpec(memory_space=pltpu.MemorySpace.SMEM),
            # expert_outputs stays in HBM; the kernel gathers routed rows manually.
            pl.BlockSpec(memory_space=pl.ANY),
        ],
        out_specs=pl.BlockSpec((Bt, S, D),
                               lambda b, row, seq, nact: (b, 0, 0)),
        scratch_shapes=[
            pltpu.VMEM((2, Bt, 1, D), jnp.float32),   # double-buffered gather pad
            pltpu.SemaphoreType.DMA((2,)),
        ],
    )

    return pl.pallas_call(
        _moe_combine_kernel,
        out_shape=jax.ShapeDtypeStruct((B, S, D), jnp.float32),
        grid_spec=grid_spec,
        compiler_params=pltpu.CompilerParams(
            dimension_semantics=("parallel",),
            vmem_limit_bytes=vmem_limit,
        ),
    )(row_sorted, seq_sorted, n_act, scl_sorted, eo2)


@functools.partial(jax.jit, static_argnames=("experts", "capacity_factor", "top_k"))
def moe_forward(x, key, *, experts=8, capacity_factor=1.0, top_k=1):
    """JAX/Pallas equivalent of MoE.forward.

    torch.randn calls inside forward are replaced by deterministic jax.random
    draws from `key`.
    """
    batch_size, seq_length, d_model = x.shape
    k_gate, k_expert = jax.random.split(key)

    # gate_scores = torch.randn(batch_size, experts)
    gate_scores = jax.random.normal(k_gate, (batch_size, experts), dtype=jnp.float32)

    # topk + scatter_  -> one-hot-ish routing mask (B, E)
    _, top_k_indices = lax.top_k(gate_scores, top_k)               # (B, K) int32
    rows = jnp.arange(batch_size)[:, None]
    mask = jnp.zeros((batch_size, experts), dtype=jnp.float32)
    mask = mask.at[rows, top_k_indices].set(1.0)

    # capacity = int(capacity_factor * batch_size / experts)
    capacity = int(capacity_factor * batch_size / experts)
    expert_capacity_mask = (mask.sum(axis=0) < capacity).astype(jnp.float32)
    mask = mask * expert_capacity_mask

    # Sparse description of mask's nonzero structure for the kernel:
    # route r=(row e, choice k) -> column top_k_indices[e, k], value mask[e, that col].
    route_scale = mask[rows, top_k_indices]                        # (B, K) in {0, 1}

    # expert_outputs = torch.randn(batch_size, experts, seq_length, d_model)
    expert_outputs = jax.random.normal(
        k_expert, (batch_size, experts, seq_length, d_model), dtype=jnp.float32)

    # Hot path in Pallas: sparse gather + row-targeted masked accumulate.
    out = moe_combine(expert_outputs, top_k_indices, route_scale)
    return out, mask, expert_outputs


if __name__ == "__main__":
    # Small shapes consistent with the module's forward.  The reference broadcast
    # forces batch == experts == seq_length.
    B, S, D = 8, 8, 128
    EXPERTS = 8
    CAPACITY_FACTOR = 2.0   # capacity = int(2.0 * 8 / 8) = 2 -> non-degenerate mask
    TOP_K = 1

    key = jax.random.PRNGKey(0)
    kx, kfwd = jax.random.split(key)
    x = jax.random.normal(kx, (B, S, D), dtype=jnp.float32)

    out, mask, expert_outputs = moe_forward(
        x, kfwd, experts=EXPERTS, capacity_factor=CAPACITY_FACTOR, top_k=TOP_K)
    out = jax.block_until_ready(out)

    # Pure-JAX reference written exactly like the PyTorch forward
    # (same right-aligned broadcast of mask.unsqueeze(-1)).
    ref = jnp.sum(expert_outputs * mask[:, :, None], axis=1)

    assert out.shape == (B, S, D)
    assert out.dtype == jnp.float32
    assert jnp.allclose(out, ref, atol=1e-5, rtol=1e-5), "mismatch vs reference"

    print("KERNEL_OK")
</pallas_src>

<mosaic_0001>
module attributes {stable_mosaic.version = 11 : i64} {
  func.func @_moe_combine_kernel(%arg0: i32, %arg1: memref<8xi32, #tpu.memory_space<smem>>, %arg2: memref<8xi32, #tpu.memory_space<smem>>, %arg3: memref<1xi32, #tpu.memory_space<smem>>, %arg4: memref<8xf32, #tpu.memory_space<smem>>, %arg5: memref<8x64x128xf32, #tpu.memory_space<any>>, %arg6: memref<4x8x128xf32, #tpu.memory_space<vmem>>, %arg7: memref<2x4x1x128xf32, #tpu.memory_space<vmem>>, %arg8: memref<2x!tpu.dma_semaphore, #tpu.memory_space<semaphore_mem>>) attributes {dimension_semantics = [#tpu.dimension_semantics<parallel>], iteration_bounds = array<i64: 2>, scalar_prefetch = 3 : i64, scratch_operands = 2 : i64, tpu.core_type = #tpu.core_type<tc>, window_params = [{transform_indices = @transform_0, window_bounds = array<i64: 8>}, {}, {transform_indices = @transform_2, window_bounds = array<i64: 4, 8, 128>}]} {
    %c4_i32 = arith.constant 4 : i32
    %0 = arith.muli %arg0, %c4_i32 : i32
    %c0 = arith.constant 0 : index
    %1 = memref.load %arg3[%c0] : memref<1xi32, #tpu.memory_space<smem>>
    %c0_i32 = arith.constant 0 : i32
    %2 = arith.cmpi sgt, %1, %c0_i32 : i32
    %3 = arith.extui %2 : i1 to i32
    %c0_i32_0 = arith.constant 0 : i32
    %4 = arith.cmpi ne, %3, %c0_i32_0 : i32
    scf.if %4 {
      %c0_11 = arith.constant 0 : index
      %13 = memref.load %arg1[%c0_11] : memref<8xi32, #tpu.memory_space<smem>>
      %c0_i32_12 = arith.constant 0 : i32
      %c0_i32_13 = arith.constant 0 : i32
      %c0_i32_14 = arith.constant 0 : i32
      %14 = tpu.memref_slice %arg5[%0, %13, %c0_i32_14] : memref<8x64x128xf32, #tpu.memory_space<any>> -> memref<4x1x128xf32, #tpu.memory_space<any>>
      %c0_i32_15 = arith.constant 0 : i32
      %c0_i32_16 = arith.constant 0 : i32
      %c0_i32_17 = arith.constant 0 : i32
      %15 = tpu.memref_slice %arg7[%c0_i32_12, %c0_i32_15, %c0_i32_16, %c0_i32_17] : memref<2x4x1x128xf32, #tpu.memory_space<vmem>> -> memref<1x4x1x128xf32, #tpu.memory_space<vmem>>
      %16 = tpu.memref_squeeze %15 : memref<1x4x1x128xf32, #tpu.memory_space<vmem>> -> memref<4x1x128xf32, #tpu.memory_space<vmem>>
      %17 = tpu.memref_slice %arg8[%c0_i32_13] : memref<2x!tpu.dma_semaphore, #tpu.memory_space<semaphore_mem>> -> memref<1x!tpu.dma_semaphore, #tpu.memory_space<semaphore_mem>>
      %18 = tpu.memref_squeeze %17 : memref<1x!tpu.dma_semaphore, #tpu.memory_space<semaphore_mem>> -> memref<!tpu.dma_semaphore, #tpu.memory_space<semaphore_mem>>
      tpu.enqueue_dma source(%14 : memref<4x1x128xf32, #tpu.memory_space<any>>) target(%16 : memref<4x1x128xf32, #tpu.memory_space<vmem>>) target_semaphore(%18 : memref<!tpu.dma_semaphore, #tpu.memory_space<semaphore_mem>>)
    } else {
    }
    %cst = arith.constant 0.000000e+00 : f32
    %5 = vector.broadcast %cst : f32 to vector<4x8x128xf32>
    %c0_1 = arith.constant 0 : index
    %c0_2 = arith.constant 0 : index
    %c0_3 = arith.constant 0 : index
    %6 = vector.load %arg6[%c0_1, %c0_2, %c0_3] : memref<4x8x128xf32, #tpu.memory_space<vmem>>, vector<4x8x128xf32>
    tpu.vector_store %arg6[%c0_1, %c0_2, %c0_3], %5 {strides = array<i32>} : memref<4x8x128xf32, #tpu.memory_space<vmem>>, vector<4x8x128xf32>,
    %c0_i32_4 = arith.constant 0 : i32
    %7 = arith.subi %1, %c0_i32_4 : i32
    %c1_i32 = arith.constant 1 : i32
    %c1_i32_5 = arith.constant 1 : i32
    %8 = arith.subi %c1_i32, %c1_i32_5 : i32
    %9 = arith.addi %7, %8 : i32
    %c1_i32_6 = arith.constant 1 : i32
    %10 = arith.divsi %9, %c1_i32_6 : i32
    %c1_i32_7 = arith.constant 1 : i32
    %c0_i32_8 = arith.constant 0 : i32
    %c0_i32_9 = arith.constant 0 : i32
    %11 = arith.subi %10, %c0_i32_9 : i32
    %12 = arith.addi %c0_i32_9, %11 : i32
    %c1_i32_10 = arith.constant 1 : i32
    scf.for %arg9 = %c0_i32_9 to %12 step %c1_i32_10  : i32 {
      %13 = arith.muli %arg9, %c1_i32_7 : i32
      %14 = arith.addi %c0_i32_8, %13 : i32
      %c2_i32 = arith.constant 2 : i32
      %c0_i32_11 = arith.constant 0 : i32
      %15 = arith.cmpi eq, %c2_i32, %c0_i32_11 : i32
      %c1_i32_12 = arith.constant 1 : i32
      %16 = arith.select %15, %c1_i32_12, %c2_i32 : i32
      %17 = arith.remsi %14, %16 : i32
      %c0_i32_13 = arith.constant 0 : i32
      %18 = arith.cmpi ne, %17, %c0_i32_13 : i32
      %c0_i32_14 = arith.constant 0 : i32
      %19 = arith.cmpi slt, %17, %c0_i32_14 : i32
      %c0_i32_15 = arith.constant 0 : i32
      %20 = arith.cmpi slt, %16, %c0_i32_15 : i32
      %21 = arith.xori %19, %20 : i1
      %22 = arith.andi %21, %18 : i1
      %23 = arith.addi %17, %16 : i32
      %24 = arith.select %22, %23, %17 : i32
      %c0_i32_16 = arith.constant 0 : i32
      %c0_i32_17 = arith.constant 0 : i32
      %25 = tpu.memref_slice %arg5[%0, %c0_i32_16, %c0_i32_17] : memref<8x64x128xf32, #tpu.memory_space<any>> -> memref<4x1x128xf32, #tpu.memory_space<any>>
      %c0_i32_18 = arith.constant 0 : i32
      %c0_i32_19 = arith.constant 0 : i32
      %c0_i32_20 = arith.constant 0 : i32
      %26 = tpu.memref_slice %arg7[%24, %c0_i32_18, %c0_i32_19, %c0_i32_20] : memref<2x4x1x128xf32, #tpu.memory_space<vmem>> -> memref<1x4x1x128xf32, #tpu.memory_space<vmem>>
      %27 = tpu.memref_squeeze %26 : memref<1x4x1x128xf32, #tpu.memory_space<vmem>> -> memref<4x1x128xf32, #tpu.memory_space<vmem>>
      %28 = tpu.memref_slice %arg8[%24] : memref<2x!tpu.dma_semaphore, #tpu.memory_space<semaphore_mem>> -> memref<1x!tpu.dma_semaphore, #tpu.memory_space<semaphore_mem>>
      %29 = tpu.memref_squeeze %28 : memref<1x!tpu.dma_semaphore, #tpu.memory_space<semaphore_mem>> -> memref<!tpu.dma_semaphore, #tpu.memory_space<semaphore_mem>>
      tpu.wait_dma2 semaphore(%29 : memref<!tpu.dma_semaphore, #tpu.memory_space<semaphore_mem>>) src(%25 : memref<4x1x128xf32, #tpu.memory_space<any>>) dst(%27 : memref<4x1x128xf32, #tpu.memory_space<vmem>>)
      %c1_i32_21 = arith.constant 1 : i32
      %30 = arith.addi %14, %c1_i32_21 : i32
      %31 = arith.cmpi slt, %30, %1 : i32
      %32 = arith.extui %31 : i1 to i32
      %c0_i32_22 = arith.constant 0 : i32
      %33 = arith.cmpi ne, %32, %c0_i32_22 : i32
      scf.if %33 {
        %c1_i32_30 = arith.constant 1 : i32
        %48 = arith.addi %14, %c1_i32_30 : i32
        %c1_i32_31 = arith.constant 1 : i32
        %49 = arith.subi %c1_i32_31, %24 : i32
        %50 = arith.index_cast %48 : i32 to index
        %51 = memref.load %arg1[%50] : memref<8xi32, #tpu.memory_space<smem>>
        %c0_i32_32 = arith.constant 0 : i32
        %52 = tpu.memref_slice %arg5[%0, %51, %c0_i32_32] : memref<8x64x128xf32, #tpu.memory_space<any>> -> memref<4x1x128xf32, #tpu.memory_space<any>>
        %c0_i32_33 = arith.constant 0 : i32
        %c0_i32_34 = arith.constant 0 : i32
        %c0_i32_35 = arith.constant 0 : i32
        %53 = tpu.memref_slice %arg7[%49, %c0_i32_33, %c0_i32_34, %c0_i32_35] : memref<2x4x1x128xf32, #tpu.memory_space<vmem>> -> memref<1x4x1x128xf32, #tpu.memory_space<vmem>>
        %54 = tpu.memref_squeeze %53 : memref<1x4x1x128xf32, #tpu.memory_space<vmem>> -> memref<4x1x128xf32, #tpu.memory_space<vmem>>
        %55 = tpu.memref_slice %arg8[%49] : memref<2x!tpu.dma_semaphore, #tpu.memory_space<semaphore_mem>> -> memref<1x!tpu.dma_semaphore, #tpu.memory_space<semaphore_mem>>
        %56 = tpu.memref_squeeze %55 : memref<1x!tpu.dma_semaphore, #tpu.memory_space<semaphore_mem>> -> memref<!tpu.dma_semaphore, #tpu.memory_space<semaphore_mem>>
        tpu.enqueue_dma source(%52 : memref<4x1x128xf32, #tpu.memory_space<any>>) target(%54 : memref<4x1x128xf32, #tpu.memory_space<vmem>>) target_semaphore(%56 : memref<!tpu.dma_semaphore, #tpu.memory_space<semaphore_mem>>)
      } else {
      }
      %34 = arith.index_cast %14 : i32 to index
      %35 = memref.load %arg2[%34] : memref<8xi32, #tpu.memory_space<smem>>
      %36 = arith.index_cast %14 : i32 to index
      %37 = memref.load %arg4[%36] : memref<8xf32, #tpu.memory_space<smem>>
      %c0_23 = arith.constant 0 : index
      %38 = arith.index_cast %35 : i32 to index
      %c0_24 = arith.constant 0 : index
      %39 = vector.load %arg6[%c0_23, %38, %c0_24] : memref<4x8x128xf32, #tpu.memory_space<vmem>>, vector<4x1x128xf32>
      %40 = arith.index_cast %24 : i32 to index
      %c0_25 = arith.constant 0 : index
      %c0_26 = arith.constant 0 : index
      %c0_27 = arith.constant 0 : index
      %41 = vector.load %arg7[%40, %c0_25, %c0_26, %c0_27] : memref<2x4x1x128xf32, #tpu.memory_space<vmem>>, vector<1x4x1x128xf32>
      %42 = vector.shape_cast %41 : vector<1x4x1x128xf32> to vector<4x1x128xf32>
      %43 = vector.broadcast %37 : f32 to vector<4x1x128xf32>
      %44 = arith.mulf %42, %43 : vector<4x1x128xf32>
      %45 = arith.addf %39, %44 : vector<4x1x128xf32>
      %c0_28 = arith.constant 0 : index
      %46 = arith.index_cast %35 : i32 to index
      %c0_29 = arith.constant 0 : index
      %47 = vector.load %arg6[%c0_28, %46, %c0_29] : memref<4x8x128xf32, #tpu.memory_space<vmem>>, vector<4x1x128xf32>
      tpu.vector_store %arg6[%c0_28, %46, %c0_29], %45 {strides = array<i32>} : memref<4x8x128xf32, #tpu.memory_space<vmem>>, vector<4x1x128xf32>,
    }
    return
  }
  func.func @transform_0(%arg0: i32, %arg1: memref<8xi32, #tpu.memory_space<smem>>, %arg2: memref<8xi32, #tpu.memory_space<smem>>, %arg3: memref<1xi32, #tpu.memory_space<smem>>) -> i32 {
    %c0_i32 = arith.constant 0 : i32
    %c0_i32_0 = arith.constant 0 : i32
    return %c0_i32 : i32
  }
  func.func @transform_2(%arg0: i32, %arg1: memref<8xi32, #tpu.memory_space<smem>>, %arg2: memref<8xi32, #tpu.memory_space<smem>>, %arg3: memref<1xi32, #tpu.memory_space<smem>>) -> (i32, i32, i32) {
    %c0_i32 = arith.constant 0 : i32
    %c0_i32_0 = arith.constant 0 : i32
    %c0_i32_1 = arith.constant 0 : i32
    return %arg0, %c0_i32, %c0_i32_0 : i32, i32, i32
  }
}

</mosaic_0001>

<bundles_post_ra>
// kernel: moe_forward.3
= control target key start
LH: loop header
LB: loop body
LE: loop exit
PB: predicated region body
PF: predicated region fallthrough
CT: control target
= control target key end

     0   :  { %s622_s24 = smov [#allocation5]   ;;  %s623_s25 = smov [#allocation6]   ;;  %s803_s0 = inlined_call_operand.vmem [shape: s32[8], index: 0, kind: input, shape index: {}]   ;;  %s804_s3 = inlined_call_operand.vmem [shape: f32[8], index: 3, kind: input, shape index: {}]   ;;  %s805_s4 = inlined_call_operand.vmem [shape: f32[8,64,128], index: 4, kind: input, shape index: {}]   ;;  %s806_s5 = inlined_call_operand.hbm [shape: f32[8,8,128], index: 5, kind: output, shape index: {}]   ;;  %s807_s1 = inlined_call_operand.vmem [shape: s32[8], index: 1, kind: input, shape index: {}]   ;;  %s808_s2 = inlined_call_operand.<no memory space> [shape: s32[1], index: 2, kind: input, shape index: {}]  }
   0x1   :  { %s11_s20 = sshll.u32 %s803_s0, 4  ;;  %s16_s23 = sshll.u32 %s807_s1, 4  ;;  %s12_s20 = int_to_ptr.vmem [resolvable:$true] %s11_s20  ;;  %s17_s23 = int_to_ptr.vmem [resolvable:$true] %s16_s23 }
   0x2   :  { %14 = dma.vmem_to_smem %s12_s20, 16, %s622_s24, [#allocation4] }
   0x3   :  { %19 = dma.vmem_to_smem %s17_s23, 16, %s623_s25, [#allocation4] }
   0x4   :  { %20 = sst [smem:[#allocation7]] %s808_s2 }
   0x5   :  { %590 = dma.done.wait [#allocation4], 32 }
   0x6   :  { %591 = vsyncadd [#allocation4], 4294967264 }
   0x7   :  { %23 = sfence }
   0x8   :  { %24 = vsyncpa [#allocation10], 0 }
   0x9   :  { %25 = vsyncpa [#allocation9], 0 }
   0xa   :  { %27 = vsyncpa [#allocation9 + $0x1], 0  ;;  %s667_s0 = smov 0   ;;  %s669_s28 = smov 0  }
   0xb   :  { %s671_s1 = smov 0   ;;  %s673_s29 = smov 0  }
   0xc LB: > { %s688_s2 = sadd.s32 4294967295, %s616_s29   ;;  %s413_s30 = sadd.s32 4294967294, %s616_s29   ;;  %s616_s29 = sphi %s673_s29, %s815_s29   ;;  %s612_s1 = sphi %s671_s1, %s814_s1   ;;  %s608_s28 = sphi %s669_s28, %s813_s28   ;;  %s604_s0 = sphi %s667_s0, %s812_s0  }
   0xd   : > { %s692_s6 = sadd.s32 1, %s616_s29   ;;  %s61_s7 = sadd.s32 1, %s612_s1 }
   0xe   : > { %s58_s8 = ssub.s32 %s616_s29, %s692_s6  ;;  %p71_p0 = scmp.ne.s32.totalorder %s612_s1, %s608_s28 }
   0xf   : > { %p59_p1 = scmp.eq.s32.totalorder %s58_s8, 0  ;;  %p72_p2 = scmp.eq.s32.totalorder %s688_s2, 1 }
  0x10   : > { %p77_p3 = scmp.ne.s32.totalorder %s608_s28, %s604_s0  ;;  %p78_p4 = scmp.eq.s32.totalorder %s413_s30, 1 }
  0x11   : > { %s703_s9 = scalar_select %p59_p1, %s612_s1, %s61_s7  }
  0x12   : > { %p705_p5 = por %p72_p2, %p71_p0  ;;  %p709_p6 = por %p78_p4, %p77_p3 }
  0x13   : > { %p414_p7 = scmp.ge.s32.totalorder %s616_s29, 1  ;;  %p85_p8 = scmp.lt.s32.totalorder %s616_s29, 3 }
  0x14   : > { %p454_p9 = scmp.eq.s32.totalorder %s688_s2, 0  ;;  %s97_s14 = sshll.u32 %s804_s3, 4  ;;  %s98_s14 = int_to_ptr.vmem [resolvable:$true] %s97_s14 }
  0x15   : > { %p86_p10 = pnand %p414_p7, %p85_p8  ;;  %s624_s15 = smov [#allocation8]  }
  0x17   : > { %p446_p11 = pneg %p86_p10  ;;  %110 = sbr.rel (%p86_p10) target bundleno = 116 (0x74), region = 24 }
  0x19   : > { %p447_p12 = pnand %p454_p9, %p446_p11 }
  0x1b   : > { %449 = dma.vmem_to_smem (!%p447_p12), %s98_s14, 16, %s624_s15, [#allocation10]  }
  0x1c   : > { %593 = dma.done.wait (%p454_p9), [#allocation10], 16  }
  0x1d   : > { %595 = vsyncadd (%p454_p9), [#allocation10], 4294967280 }
  0x1e   : > { %117 = sfence }
  0x1f   : > { %s124_s16 = sand.u32 1, %s608_s28   ;;  %s720_s17 = sld [smem:[#allocation7]] }
  0x20   : > { %s418_s18 = sshll.u32 %s124_s16, 5 }
  0x21   : > { %s724_s19 = scalar_lea.vmem [#allocation11], %s418_s18 }
  0x25   : > { %p420_p13 = scmp.le.s32.totalorder %s720_s17, 0 }
  0x26   : > { %s134_s20 = sld [smem:[#allocation5]] (!%p420_p13)  ;;  %s437_s21 = sshll.u32 (!%p420_p13), %s688_s2, 8 }
  0x27   : > { %133 = sbr.rel (%p420_p13) target bundleno = 52 (0x34), region = 32 }
  0x2c   : > { %s136_s22 = sadd.s32 %s437_s21, %s134_s20 }
  0x2d   : > { %s137_s25 = scalar_lea.vmem %s805_s4, %s136_s22 }
  0x2e   : > { %v152_v0 = vld [vmem:[%s137_s25] sm:$0x1] }
  0x2f   : > { %v154_v1 = vld [vmem:[%s137_s25 + $0x40] sm:$0x1]  ;;  %153 = vst [vmem:[#allocation2] sm:$0x1] %v152_v0 }
  0x30   : > { %v156_v2 = vld [vmem:[%s137_s25 + $0x80] sm:$0x1]  ;;  %155 = vst [vmem:[#allocation2 + $0x1] sm:$0x1] %v154_v1 }
  0x31   : > { %v158_v3 = vld [vmem:[%s137_s25 + $0xc0] sm:$0x1]  ;;  %157 = vst [vmem:[#allocation2 + $0x2] sm:$0x1] %v156_v2 }
  0x32   : > { %159 = vst [vmem:[#allocation2 + $0x3] sm:$0x1] %v158_v3 }
  0x33   : > { %183 = vsyncadd [#allocation3], 64 }
  0x34 PF: > { %v625_v4 = vmov 0.0   ;;  %386 = sbr.rel (%p420_p13) target bundleno = 100 (0x64), region = 146  ;;  %s739_s26 = smov (!%p420_p13), 0  }
  0x35   : > { %184 = vst [vmem:[%s724_s19] sm:$0xff] %v625_v4 }
  0x36   : > { %185 = vst [vmem:[%s724_s19 + $0x8] sm:$0xff] %v625_v4 }
  0x37   : > { %186 = vst [vmem:[%s724_s19 + $0x10] sm:$0xff] %v625_v4 }
  0x38   : > { %187 = vst [vmem:[%s724_s19 + $0x18] sm:$0xff] %v625_v4 }
  0x39 LB: >> { %p194_p0 = scmp.lt.s32.totalorder %s620_s26, 0  ;;  %s195_s27 = ssub.s32 0, %s620_s26  ;;  %s620_s26 = sphi %s739_s26, %s811_s26  }
  0x3a   : >> { %s423_s30 = smin.u32 %s620_s26, %s195_s27 }
  0x3b   : >> { %s197_s7 = sand.u32 1, %s423_s30  }
  0x3c   : >> { %s198_s8 = ssub.s32 0, %s197_s7 }
  0x3d   : >> { %s817_s8 = smov (!%p194_p0, %s198_s8), %s197_s7 }
  0x3e   : >> { %p425_p1 = scmp.lt.s32.totalorder %s817_s8, 0  ;;  %s204_s12 = sadd.s32 2, %s817_s8 }
  0x40   : >> { %s819_s12 = smov (!%p425_p1, %s204_s12), %s817_s8 }
  0x41   : >> { %s426_s13 = sshll.u32 %s819_s12, 2  ;;  %s208_s15 = scalar_lea.sflag [#allocation3], %s819_s12 }
  0x42   : >> { %s207_s14 = scalar_lea.vmem [#allocation2], %s426_s13 }
  0x43   : >> { %596 = dma.done.wait %s208_s15, 64 }
  0x44   : >> { %597 = vsyncadd %s208_s15, 4294967232  ;;  %s748_s18 = sadd.s32 1, %s620_s26  }
  0x45   : >> { %p427_p2 = scmp.ge.s32.totalorder %s748_s18, %s720_s17 }
  0x46   : >> { %s218_s20 = ssub.s32 (!%p427_p2), 1, %s819_s12  ;;  %s219_s21 = sld [smem:[#allocation5 + %s748_s18]] (!%p427_p2) }
  0x47   : >> { %217 = sbr.rel (%p427_p2) target bundleno = 84 (0x54), region = 73  ;;  %s438_s22 = sshll.u32 (!%p427_p2), %s688_s2, 8 }
  0x48   : >> { %s429_s23 = sshll.u32 (!%p427_p2), %s218_s20, 2  ;;  %s225_s8 = scalar_lea.sflag (!%p427_p2), [#allocation3], %s218_s20 }
  0x49   : >> { %s224_s7 = scalar_lea.vmem (!%p427_p2), [#allocation2], %s429_s23 }
  0x4c   : >> { %s221_s24 = sadd.s32 %s438_s22, %s219_s21 }
  0x4d   : >> { %s222_s30 = scalar_lea.vmem %s805_s4, %s221_s24 }
  0x4e   : >> { %v240_v5 = vld [vmem:[%s222_s30] sm:$0x1] }
  0x4f   : >> { %v242_v6 = vld [vmem:[%s222_s30 + $0x40] sm:$0x1]  ;;  %241 = vst [vmem:[%s224_s7] sm:$0x1] %v240_v5 }
  0x50   : >> { %v244_v7 = vld [vmem:[%s222_s30 + $0x80] sm:$0x1]  ;;  %243 = vst [vmem:[%s224_s7 + $0x1] sm:$0x1] %v242_v6 }
  0x51   : >> { %v246_v8 = vld [vmem:[%s222_s30 + $0xc0] sm:$0x1]  ;;  %245 = vst [vmem:[%s224_s7 + $0x2] sm:$0x1] %v244_v7 }
  0x52   : >> { %247 = vst [vmem:[%s224_s7 + $0x3] sm:$0x1] %v246_v8 }
  0x53   : >> { %271 = vsyncadd %s225_s8, 64 }
  0x54 PF: >> { %s272_s12 = sld [smem:[#allocation6 + %s620_s26]] }
  0x55   : >> { %s273_s13 = sld [smem:[#allocation8 + %s620_s26]]  ;;  %s811_s26 = smov %s748_s18 }
  0x59   : >> { %v279_v9 = vld [vmem:[%s207_s14] sm:$0x1]  ;;  %v280_v10 = vld [vmem:[%s207_s14 + $0x1] sm:$0x1]  ;;  %v281_v11 = vld [vmem:[%s207_s14 + $0x2] sm:$0x1] }
  0x5a   : >> { %v282_v12 = vld [vmem:[%s207_s14 + $0x3] sm:$0x1]  ;;  %s274_s15 = scalar_lea.vmem %s724_s19, %s272_s12 [#allocation11] }
  0x5b   : >> { %v275_v13 = vld [vmem:[%s274_s15] sm:$0x1]  ;;  %v283_v14 = vstv %s273_s13  ;;  %v276_v15 = vld [vmem:[%s274_s15 + $0x8] sm:$0x1]  ;;  %v277_v16 = vld [vmem:[%s274_s15 + $0x10] sm:$0x1] }
  0x5c   : >> { %v284_v17 = vmul.f32 %v283_v14, %v279_v9  ;;  %v285_v18 = vmul.f32 %v283_v14, %v280_v10  ;;  %v286_v19 = vmul.f32 %v283_v14, %v281_v11  ;;  %v278_v20 = vld [vmem:[%s274_s15 + $0x18] sm:$0x1]  ;;  %v287_v21 = vmul.f32 %v283_v14, %v282_v12 }
  0x5e   : >> { %v288_v22 = vadd.f32 %v284_v17, %v275_v13  ;;  %v289_v23 = vadd.f32 %v285_v18, %v276_v15  ;;  %v290_v24 = vadd.f32 %v286_v19, %v277_v16  ;;  %v291_v25 = vadd.f32 %v287_v21, %v278_v20 }
  0x5f   : > { %193 = sbr.rel (!%p427_p2) target bundleno = 57 (0x39), region = 152 }
  0x60   : >> { %292 = vst [vmem:[%s274_s15] sm:$0x1] %v288_v22 }
  0x61   : >> { %293 = vst [vmem:[%s274_s15 + $0x8] sm:$0x1] %v289_v23 }
  0x62   : >> { %294 = vst [vmem:[%s274_s15 + $0x10] sm:$0x1] %v290_v24 }
  0x63   : >> { %295 = vst [vmem:[%s274_s15 + $0x18] sm:$0x1] %v291_v25 }
  0x64 PF: > { %s439_s26 = sshll.u32 %s688_s2, 5  ;;  %s309_s22 = sshll.u32 %s724_s19, 4  ;;  %s310_s22 = int_to_ptr.vmem [resolvable:$true] %s309_s22 }
  0x65   : > { %s308_s21 = scalar_lea.hbm %s806_s5, %s439_s26  ;;  %s297_s24 = scalar_lea.sflag [#allocation9], %s124_s16 }
  0x66   : > { %s311_s23 = sshll.u32 %s308_s21, 4  ;;  %s562_s2 = scalar_lea.hbm %s806_s5, 64  ;;  %s312_s23 = int_to_ptr.hbm [resolvable:$true] %s311_s23 }
  0x67   : > { %s556_s25 = sshra.s32 %s312_s23, 4  ;;  %s557_s25 = int_to_ptr.hbm [resolvable:$true] %s556_s25 }
  0x68   : > { %s558_s18 = scalar_lea.hbm %s557_s25, 32  ;;  %p563_p8 = scmp.lt.s32.totalorder %s557_s25, %s806_s5 }
  0x69   : > { %p559_p3 = scmp.ne.s32.totalorder %s557_s25, %s558_s18  ;;  %p564_p9 = scmp.lt.s32.totalorder %s562_s2, %s558_s18 }
  0x6b   : > { %p560_p4 = pnand %p559_p3, %p705_p5  ;;  %p565_p10 = por %p564_p9, %p563_p8 }
  0x6d   : > { %p561_p7 = pneg %p560_p4 }
  0x6f   : > { %p566_p11 = pnand %p565_p10, %p561_p7 }
  0x71   : > { %569 = shalt.err (!%p566_p11)
}
  0x72   : > { %s626_s16 = smov 128   ;;  %s627_s19 = smov 8  }
  0x73   : > { %444 = dma.vmem_to_hbm [thread:$0]  (%p705_p5), %s310_s22, 512, %s312_s23, %s297_s24, %s626_s16, %s626_s16, %s627_s19  }
  0x74 PF: > { %p456_p12 = scmp.ge.s32.totalorder %s616_s29, 2  ;;  %s326_s8 = sand.u32 1, %s604_s0  }
  0x75   : > { %s327_s12 = scalar_lea.sflag [#allocation9], %s326_s8 }
  0x76   : > { %p451_p13 = pnand %p456_p12, %p709_p6 }
  0x78   : > { %p452_p0 = pneg %p451_p13 }
  0x7a   : > { %599 = dma.done.wait (%p452_p0), %s327_s12, 512  }
  0x7b   : > { %601 = vsyncadd (%p452_p0), %s327_s12, 4294966784  ;;  %p30_p1 = scmp.ge.s32.totalorder %s692_s6, 4   ;;  %s812_s0 = smov %s608_s28 }
  0x7c   : > { %s813_s28 = smov %s612_s1  ;;  %s814_s1 = smov %s703_s9 }
  0x7d   : > { %s815_s29 = smov %s692_s6  ;;  %32 = sbr.rel (!%p30_p1) target bundleno = 12 (0xc), region = 163 }
  0x82   :  { %333 = vsyncpa [#allocation9], 1 }
  0x83   :  { %335 = vsyncpa [#allocation9 + $0x1], 1 }
  0x84   :  { %336 = vsyncpa [#allocation10], 1 }
  0x85   :  { %338 = vsyncpa [#allocation10 + $0x1], 1 }
  0x86   :  { %339 = vsyncmov [#allocation3] }
  0x89   :  { %s340_s29 = vpop.sfrf %339 }
  0x8a   :  { %p435_p5 = scmp.ne.s32.totalorder %s340_s29, 0 }
  0x8c   :  { %344 = shalt.err (%p435_p5)  }
  0x8d   :  { %346 = vsyncmov [#allocation3 + $0x1] }
  0x90   :  { %s347_s10 = vpop.sfrf %346 }
  0x91   :  { %p436_p6 = scmp.ne.s32.totalorder %s347_s10, 0 }
  0x93   :  { %351 = shalt.err (%p436_p6)  }

</bundles_post_ra>
